<compile_context>
chip_gen: v7x
topology: tpu7x:2x2x1
jax: 0.10.0
libtpu: 0.0.40
codegen_flags: <defaults>
</compile_context>

<pallas_src>
import functools

import jax
import jax.numpy as jnp
from jax.experimental import pallas as pl
from jax.experimental.pallas import tpu as pltpu

HEAD_PAD = 128   # fused head output padded to one full lane width
TILE_B = 256     # default batch rows per grid step (multiple of 16 for bf16 sublanes)


def _debias_kernel(x_ref, w1_ref, b1_ref, w2_ref, b2_ref, wh_ref, bh_ref, o_ref):
    """Fused forward for one batch tile: MLP backbone + fused (cls||dom) head."""
    x = x_ref[...]                                               # (tile_b, in_dim) bf16

    # backbone fc1 + ReLU (bf16 MXU push, f32 accumulate, f32 bias)
    h = jnp.dot(x, w1_ref[...], preferred_element_type=jnp.float32) + b1_ref[...]
    h = jnp.maximum(h, 0.0).astype(w2_ref.dtype)

    # backbone fc2
    feat = jnp.dot(h, w2_ref[...], preferred_element_type=jnp.float32) + b2_ref[...]
    feat = feat.astype(wh_ref.dtype)

    # fused classifier||domain head -> one lane-dense (tile_b, 128) store
    o_ref[...] = jnp.dot(feat, wh_ref[...],
                         preferred_element_type=jnp.float32) + bh_ref[...]


@functools.partial(jax.jit, static_argnames=("tile_b",))
def embedding_debias_forward(x, params, tile_b=TILE_B):
    """Returns (c, d): classifier logits and domain logits (GradReverse is identity fwd)."""
    B, in_dim = x.shape
    h_dim = params["w1"].shape[1]
    out_dim = params["w2"].shape[1]
    nc = params["wc"].shape[1]
    nd = params["wd"].shape[1]
    assert nc + nd <= HEAD_PAD, "fused head wider than one lane slab; raise HEAD_PAD"

    # ---- wrapper-side prep: bf16 weights/activations, f32 biases ----
    xb = x.astype(jnp.bfloat16)
    w1 = params["w1"].astype(jnp.bfloat16)
    w2 = params["w2"].astype(jnp.bfloat16)
    b1 = params["b1"].astype(jnp.float32)
    b2 = params["b2"].astype(jnp.float32)

    # fuse the two heads and pad to 128 output lanes (unmasked vst in kernel)
    wh = jnp.concatenate([params["wc"], params["wd"]], axis=1)          # (out_dim, nc+nd)
    wh = jnp.pad(wh, ((0, 0), (0, HEAD_PAD - (nc + nd)))).astype(jnp.bfloat16)
    bh = jnp.concatenate([params["bc"], params["bd"]], axis=1)          # (1, nc+nd)
    bh = jnp.pad(bh, ((0, 0), (0, HEAD_PAD - (nc + nd)))).astype(jnp.float32)

    # clamp tile to the 16-row-aligned batch, then pad batch to a tile multiple
    # so every grid step is full and the batch axis stays sublane-aligned.
    eff_tile = min(tile_b, 16 * pl.cdiv(B, 16))
    Bp = eff_tile * pl.cdiv(B, eff_tile)
    if Bp != B:
        xb = jnp.pad(xb, ((0, Bp - B), (0, 0)))
    grid = (Bp // eff_tile,)

    out = pl.pallas_call(
        _debias_kernel,
        out_shape=jax.ShapeDtypeStruct((Bp, HEAD_PAD), jnp.float32),
        grid_spec=pltpu.PrefetchScalarGridSpec(
            num_scalar_prefetch=0,
            grid=grid,
            in_specs=[
                pl.BlockSpec((eff_tile, in_dim), lambda i: (i, 0)),   # x tile (pipelined)
                pl.BlockSpec((in_dim, h_dim), lambda i: (0, 0)),      # w1 (resident)
                pl.BlockSpec((1, h_dim), lambda i: (0, 0)),           # b1
                pl.BlockSpec((h_dim, out_dim), lambda i: (0, 0)),     # w2
                pl.BlockSpec((1, out_dim), lambda i: (0, 0)),         # b2
                pl.BlockSpec((out_dim, HEAD_PAD), lambda i: (0, 0)),  # fused head W
                pl.BlockSpec((1, HEAD_PAD), lambda i: (0, 0)),        # fused head b
            ],
            out_specs=pl.BlockSpec((eff_tile, HEAD_PAD), lambda i: (i, 0)),
        ),
        compiler_params=pltpu.CompilerParams(
            dimension_semantics=("parallel",),      # megacore-shardable on v7x
            vmem_limit_bytes=32 << 20,              # fits v7x 64 MiB physical VMEM
        ),
    )(xb, w1, b1, w2, b2, wh, bh)

    c = out[:B, :nc]
    d = out[:B, nc:nc + nd]
    return c, d


def _init_linear(key, in_dim, out_dim):
    """Deterministic PyTorch-style init: U(-1/sqrt(in), 1/sqrt(in)).
    Weight stored transposed: (in_dim, out_dim)."""
    kw, kb = jax.random.split(key)
    bound = 1.0 / (in_dim ** 0.5)
    w = jax.random.uniform(kw, (in_dim, out_dim), jnp.float32, -bound, bound)
    b = jax.random.uniform(kb, (1, out_dim), jnp.float32, -bound, bound)
    return w, b


def make_params(key, in_dim, h_dim, out_dim, num_classes, num_domains):
    k1, k2, k3, k4 = jax.random.split(key, 4)
    w1, b1 = _init_linear(k1, in_dim, h_dim)          # mlp.fc1
    w2, b2 = _init_linear(k2, h_dim, out_dim)         # mlp.fc2
    wc, bc = _init_linear(k3, out_dim, num_classes)   # classifier_head.fc
    wd, bd = _init_linear(k4, out_dim, num_domains)   # domain_head.lin
    return dict(w1=w1, b1=b1, w2=w2, b2=b2, wc=wc, bc=bc, wd=wd, bd=bd)


def _reference(x, p):
    """Pure-JAX f32 reference of the PyTorch forward."""
    h = jnp.maximum(x @ p["w1"] + p["b1"], 0.0)
    feat = h @ p["w2"] + p["b2"]
    return feat @ p["wc"] + p["bc"], feat @ p["wd"] + p["bd"]


if __name__ == "__main__":
    # small config consistent with the module's forward
    batch, in_dim, h_dim, out_dim = 256, 32, 32, 32
    num_classes, num_domains = 2, 4

    key = jax.random.PRNGKey(0)
    kx, kp = jax.random.split(key)
    x = jax.random.normal(kx, (batch, in_dim), jnp.float32)
    params = make_params(kp, in_dim, h_dim, out_dim, num_classes, num_domains)

    c, d = embedding_debias_forward(x, params)
    jax.block_until_ready((c, d))

    c_ref, d_ref = _reference(x, params)
    assert c.shape == (batch, num_classes) and d.shape == (batch, num_domains)
    # bf16 matmuls vs. f32 reference -> loosened tolerance (rounding, not a bug)
    assert jnp.allclose(c, c_ref, atol=5e-2, rtol=5e-2), "classifier head mismatch"
    assert jnp.allclose(d, d_ref, atol=5e-2, rtol=5e-2), "domain head mismatch"

    print("KERNEL_OK")
</pallas_src>

<mosaic_0001>
module attributes {stable_mosaic.version = 11 : i64} {
  func.func @_debias_kernel(%arg0: i32, %arg1: memref<256x32xbf16, #tpu.memory_space<vmem>>, %arg2: memref<32x32xbf16, #tpu.memory_space<vmem>>, %arg3: memref<1x32xf32, #tpu.memory_space<vmem>>, %arg4: memref<32x32xbf16, #tpu.memory_space<vmem>>, %arg5: memref<1x32xf32, #tpu.memory_space<vmem>>, %arg6: memref<32x128xbf16, #tpu.memory_space<vmem>>, %arg7: memref<1x128xf32, #tpu.memory_space<vmem>>, %arg8: memref<256x128xf32, #tpu.memory_space<vmem>>) attributes {dimension_semantics = [#tpu.dimension_semantics<parallel>], iteration_bounds = array<i64: 1>, scalar_prefetch = 0 : i64, scratch_operands = 0 : i64, tpu.core_type = #tpu.core_type<tc>, window_params = [{transform_indices = @transform_0, window_bounds = array<i64: 256, 32>}, {pipeline_mode = #tpu.pipeline_mode<synchronous>, transform_indices = @transform_1, window_bounds = array<i64: 32, 32>}, {pipeline_mode = #tpu.pipeline_mode<synchronous>, transform_indices = @transform_2, window_bounds = array<i64: 1, 32>}, {pipeline_mode = #tpu.pipeline_mode<synchronous>, transform_indices = @transform_3, window_bounds = array<i64: 32, 32>}, {pipeline_mode = #tpu.pipeline_mode<synchronous>, transform_indices = @transform_4, window_bounds = array<i64: 1, 32>}, {pipeline_mode = #tpu.pipeline_mode<synchronous>, transform_indices = @transform_5, window_bounds = array<i64: 32, 128>}, {pipeline_mode = #tpu.pipeline_mode<synchronous>, transform_indices = @transform_6, window_bounds = array<i64: 1, 128>}, {transform_indices = @transform_7, window_bounds = array<i64: 256, 128>}]} {
    %c0 = arith.constant 0 : index
    %c0_0 = arith.constant 0 : index
    %0 = vector.load %arg1[%c0, %c0_0] : memref<256x32xbf16, #tpu.memory_space<vmem>>, vector<256x32xbf16>
    %c0_1 = arith.constant 0 : index
    %c0_2 = arith.constant 0 : index
    %1 = vector.load %arg2[%c0_1, %c0_2] : memref<32x32xbf16, #tpu.memory_space<vmem>>, vector<32x32xbf16>
    %cst = arith.constant dense<0.000000e+00> : vector<256x32xf32>
    %2 = tpu.matmul %0, %1, %cst {dimension_numbers = #tpu.dot_dimension_numbers<[1], [0], [0], [1], [0, 0, 1, 1], [], []>} : vector<256x32xbf16>, vector<32x32xbf16>, vector<256x32xf32> -> vector<256x32xf32>
    %c0_3 = arith.constant 0 : index
    %c0_4 = arith.constant 0 : index
    %3 = vector.load %arg3[%c0_3, %c0_4] : memref<1x32xf32, #tpu.memory_space<vmem>>, vector<1x32xf32>
    %4 = vector.broadcast %3 : vector<1x32xf32> to vector<256x32xf32>
    %5 = arith.addf %2, %4 : vector<256x32xf32>
    %cst_5 = arith.constant 0.000000e+00 : f32
    %6 = vector.broadcast %cst_5 : f32 to vector<256x32xf32>
    %7 = arith.maximumf %5, %6 : vector<256x32xf32>
    %8 = arith.truncf %7 : vector<256x32xf32> to vector<256x32xbf16>
    %c0_6 = arith.constant 0 : index
    %c0_7 = arith.constant 0 : index
    %9 = vector.load %arg4[%c0_6, %c0_7] : memref<32x32xbf16, #tpu.memory_space<vmem>>, vector<32x32xbf16>
    %cst_8 = arith.constant dense<0.000000e+00> : vector<256x32xf32>
    %10 = tpu.matmul %8, %9, %cst_8 {dimension_numbers = #tpu.dot_dimension_numbers<[1], [0], [0], [1], [0, 0, 1, 1], [], []>} : vector<256x32xbf16>, vector<32x32xbf16>, vector<256x32xf32> -> vector<256x32xf32>
    %c0_9 = arith.constant 0 : index
    %c0_10 = arith.constant 0 : index
    %11 = vector.load %arg5[%c0_9, %c0_10] : memref<1x32xf32, #tpu.memory_space<vmem>>, vector<1x32xf32>
    %12 = vector.broadcast %11 : vector<1x32xf32> to vector<256x32xf32>
    %13 = arith.addf %10, %12 : vector<256x32xf32>
    %14 = arith.truncf %13 : vector<256x32xf32> to vector<256x32xbf16>
    %c0_11 = arith.constant 0 : index
    %c0_12 = arith.constant 0 : index
    %15 = vector.load %arg6[%c0_11, %c0_12] : memref<32x128xbf16, #tpu.memory_space<vmem>>, vector<32x128xbf16>
    %cst_13 = arith.constant dense<0.000000e+00> : vector<256x128xf32>
    %16 = tpu.matmul %14, %15, %cst_13 {dimension_numbers = #tpu.dot_dimension_numbers<[1], [0], [0], [1], [0, 0, 1, 1], [], []>} : vector<256x32xbf16>, vector<32x128xbf16>, vector<256x128xf32> -> vector<256x128xf32>
    %c0_14 = arith.constant 0 : index
    %c0_15 = arith.constant 0 : index
    %17 = vector.load %arg7[%c0_14, %c0_15] : memref<1x128xf32, #tpu.memory_space<vmem>>, vector<1x128xf32>
    %18 = vector.broadcast %17 : vector<1x128xf32> to vector<256x128xf32>
    %19 = arith.addf %16, %18 : vector<256x128xf32>
    %c0_16 = arith.constant 0 : index
    %c0_17 = arith.constant 0 : index
    %20 = vector.load %arg8[%c0_16, %c0_17] : memref<256x128xf32, #tpu.memory_space<vmem>>, vector<256x128xf32>
    tpu.vector_store %arg8[%c0_16, %c0_17], %19 {strides = array<i32>} : memref<256x128xf32, #tpu.memory_space<vmem>>, vector<256x128xf32>,
    return
  }
  func.func @transform_0(%arg0: i32) -> (i32, i32) {
    %c0_i32 = arith.constant 0 : i32
    %c0_i32_0 = arith.constant 0 : i32
    return %arg0, %c0_i32 : i32, i32
  }
  func.func @transform_1(%arg0: i32) -> (i32, i32) {
    %c0_i32 = arith.constant 0 : i32
    %c0_i32_0 = arith.constant 0 : i32
    %c0_i32_1 = arith.constant 0 : i32
    return %c0_i32, %c0_i32_0 : i32, i32
  }
  func.func @transform_2(%arg0: i32) -> (i32, i32) {
    %c0_i32 = arith.constant 0 : i32
    %c0_i32_0 = arith.constant 0 : i32
    %c0_i32_1 = arith.constant 0 : i32
    return %c0_i32, %c0_i32_0 : i32, i32
  }
  func.func @transform_3(%arg0: i32) -> (i32, i32) {
    %c0_i32 = arith.constant 0 : i32
    %c0_i32_0 = arith.constant 0 : i32
    %c0_i32_1 = arith.constant 0 : i32
    return %c0_i32, %c0_i32_0 : i32, i32
  }
  func.func @transform_4(%arg0: i32) -> (i32, i32) {
    %c0_i32 = arith.constant 0 : i32
    %c0_i32_0 = arith.constant 0 : i32
    %c0_i32_1 = arith.constant 0 : i32
    return %c0_i32, %c0_i32_0 : i32, i32
  }
  func.func @transform_5(%arg0: i32) -> (i32, i32) {
    %c0_i32 = arith.constant 0 : i32
    %c0_i32_0 = arith.constant 0 : i32
    %c0_i32_1 = arith.constant 0 : i32
    return %c0_i32, %c0_i32_0 : i32, i32
  }
  func.func @transform_6(%arg0: i32) -> (i32, i32) {
    %c0_i32 = arith.constant 0 : i32
    %c0_i32_0 = arith.constant 0 : i32
    %c0_i32_1 = arith.constant 0 : i32
    return %c0_i32, %c0_i32_0 : i32, i32
  }
  func.func @transform_7(%arg0: i32) -> (i32, i32) {
    %c0_i32 = arith.constant 0 : i32
    %c0_i32_0 = arith.constant 0 : i32
    return %arg0, %c0_i32 : i32, i32
  }
}

</mosaic_0001>

<bundles_post_ra>
// kernel: embedding_debias_forward.1
= control target key start
LH: loop header
LB: loop body
LE: loop exit
PB: predicated region body
PF: predicated region fallthrough
CT: control target
= control target key end

     0   :  { %vm162_vm0 = vcmask 261120   ;;  %s1564_s1 = inlined_call_operand.vmem [shape: bf16[32,32], index: 1, kind: input, shape index: {}]   ;;  %s1565_s0 = inlined_call_operand.vmem [shape: bf16[256,32], index: 0, kind: input, shape index: {}]   ;;  %s1566_s3 = inlined_call_operand.vmem [shape: bf16[32,32], index: 3, kind: input, shape index: {}]   ;;  %s1567_s5 = inlined_call_operand.vmem [shape: bf16[32,128], index: 5, kind: input, shape index: {}]   ;;  %s1568_s2 = inlined_call_operand.vmem [shape: f32[1,32], index: 2, kind: input, shape index: {}]   ;;  %s1569_s4 = inlined_call_operand.vmem [shape: f32[1,32], index: 4, kind: input, shape index: {}]   ;;  %s1570_s6 = inlined_call_operand.vmem [shape: f32[1,128], index: 6, kind: input, shape index: {}]   ;;  %s1571_s7 = inlined_call_operand.vmem [shape: f32[256,128], index: 7, kind: output, shape index: {}]  }
   0x1   :  { %v1175_v0 = vld [vmem:[%s1564_s1] sm:$0xff]   ;;  %v1176_v1 = vld [vmem:[%s1564_s1 + $0x8] sm:$0xff]   ;;  %v1179_v4 = vld [vmem:[%s1565_s0 + $0x10] sm:$0xff]  }
   0x2   :  { %1063 = vmatprep.subr.bf16.mxu0 %v1175_v0  ;;  %v1177_v2 = vld [vmem:[%s1565_s0] sm:$0xff]   ;;  %1171 = vmatprep.subr.bf16.mxu1 %v1175_v0  ;;  %v1178_v3 = vld [vmem:[%s1565_s0 + $0x8] sm:$0xff]   ;;  %v1187_v7 = vld [vmem:[%s1565_s0 + $0x50] sm:$0xff]  }
   0x3   :  { %1064 = vmatpush3.bf16.msra.mxu0 %v1175_v0  ;;  %1173 = vmatpush3.bf16.msra.mxu1 %v1175_v0  ;;  %v1185_v5 = vld [vmem:[%s1565_s0 + $0x40] sm:$0xff]   ;;  %v1186_v6 = vld [vmem:[%s1565_s0 + $0x48] sm:$0xff]   ;;  %v1180_v8 = vld [vmem:[%s1565_s0 + $0x18] sm:$0xff]  }
   0x4   :  { %1065 = vmatprep.subr.bf16.mxu0 %v1176_v1  ;;  %1067 = vmatprep.mubr.msk.bf16.mxu0 %vm162_vm0, %v1177_v2  ;;  %v1181_v9 = vld [vmem:[%s1565_s0 + $0x20] sm:$0xff]   ;;  %v1188_v10 = vld [vmem:[%s1565_s0 + $0x58] sm:$0xff]   ;;  %v1194_v13 = vld [vmem:[%s1566_s3 + $0x8] sm:$0xff]  }
   0x5   :  { %1172 = vmatprep.subr.bf16.mxu1 %v1176_v1  ;;  %1083 = vmatprep.mubr.msk.bf16.mxu1 %vm162_vm0, %v1185_v5  ;;  %v1189_v11 = vld [vmem:[%s1565_s0 + $0x60] sm:$0xff]   ;;  %v1182_v14 = vld [vmem:[%s1565_s0 + $0x28] sm:$0xff]   ;;  %v1183_v15 = vld [vmem:[%s1565_s0 + $0x30] sm:$0xff]  }
   0x6   :  { %v1193_v12 = vld [vmem:[%s1566_s3] sm:$0xff]   ;;  %v1190_v16 = vld [vmem:[%s1565_s0 + $0x68] sm:$0xff]   ;;  %v1191_v17 = vld [vmem:[%s1565_s0 + $0x70] sm:$0xff]  }
   0x7   :  { %1066 = vmatpush3.bf16.msra.mxu0 %v1176_v1  ;;  %1174 = vmatpush3.bf16.msra.mxu1 %v1176_v1  ;;  %v1184_v18 = vld [vmem:[%s1565_s0 + $0x38] sm:$0xff]   ;;  %v1195_v20 = vld [vmem:[%s1567_s5] sm:$0xff]   ;;  %v1196_v21 = vld [vmem:[%s1567_s5 + $0x8] sm:$0xff]  }
   0x8   :  { %1099 = vmatprep.subr.bf16.mxu1 %v1193_v12  ;;  %v1192_v19 = vld [vmem:[%s1565_s0 + $0x78] sm:$0xff]   ;;  %1135 = vmatprep.subr.bf16.mxu0 %v1195_v20  ;;  %v1322_v22 = vld [vmem:[%s1568_s2] ss:$0 sm:$0xff] }
   0xa   :  { %1068 = vmatmul.mubr.msk.bf16.vlgmr.msra.gmra.mrb[0].mxu0 %vm162_vm0, %v1178_v3  ;;  %1084 = vmatmul.mubr.msk.bf16.vlgmr.msra.gmra.mrb[0].mxu1 %vm162_vm0, %v1186_v6 }
   0xb   :  { %1071 = vmatprep.mubr.msk.bf16.mxu0 %vm162_vm0, %v1179_v4  ;;  %1087 = vmatprep.mubr.msk.bf16.mxu1 %vm162_vm0, %v1187_v7 }
   0xc   :  { %1100 = vmatpush3.bf16.msra.mxu1 %v1193_v12  ;;  %1136 = vmatpush3.bf16.msra.mxu0 %v1195_v20 }
   0xd   :  { %1101 = vmatprep.subr.bf16.mxu1 %v1194_v13  ;;  %1137 = vmatprep.subr.bf16.mxu0 %v1196_v21 }
  0x10   :  { %1102 = vmatpush3.bf16.msra.mxu1 %v1194_v13  ;;  %1138 = vmatpush3.bf16.msra.mxu0 %v1196_v21 }
  0x12   :  { %1072 = vmatmul.mubr.msk.bf16.gmra.mrb[4].mxu0 %vm162_vm0, %v1180_v8  ;;  %1088 = vmatmul.mubr.msk.bf16.gmra.mrb[4].mxu1 %vm162_vm0, %v1188_v10 }
  0x13   :  { %1075 = vmatprep.mubr.msk.bf16.mxu0 %vm162_vm0, %v1181_v9  ;;  %1091 = vmatprep.mubr.msk.bf16.mxu1 %vm162_vm0, %v1189_v11 }
  0x1a   :  { %1076 = vmatmul.mubr.msk.bf16.gmra.mrb[8].mxu0 %vm162_vm0, %v1182_v14  ;;  %1092 = vmatmul.mubr.msk.bf16.gmra.mrb[8].mxu1 %vm162_vm0, %v1190_v16 }
  0x1b   :  { %1079 = vmatprep.mubr.msk.bf16.mxu0 %vm162_vm0, %v1183_v15  ;;  %1095 = vmatprep.mubr.msk.bf16.mxu1 %vm162_vm0, %v1191_v17 }
  0x22   :  { %1080 = vmatmul.mubr.msk.bf16.gmra.mrb[12].mxu0 %vm162_vm0, %v1184_v18  ;;  %1096 = vmatmul.mubr.msk.bf16.gmra.mrb[12].mxu1 %vm162_vm0, %v1192_v19 }
  0xdd   :  { %v1069_v23 = vpop.f32.mrb[0].mxu0  ;;  %v1085_v30 = vpop.f32.mrb[0].mxu1 }
  0xde   :  { %v254_v24 = vadd.f32 %v1069_v23, %v1322_v22  ;;  %v245_v25 = vpop.f32.mrb[1].mxu0  ;;  %v318_v32 = vadd.f32 %v1085_v30, %v1322_v22  ;;  %v309_v33 = vpop.f32.mrb[1].mxu1 }
  0xdf   :  { %v246_v26 = vadd.f32 %v1322_v22, %v245_v25  ;;  %v1070_v27 = vpop.f32.mrb[2].mxu0  ;;  %v310_v36 = vadd.f32 %v1322_v22, %v309_v33  ;;  %v1086_v37 = vpop.f32.mrb[2].mxu1 }
  0xe0   :  { %v257_v28 = vadd.f32 %v1070_v27, %v1322_v22  ;;  %v248_v29 = vpop.f32.mrb[3].mxu0  ;;  %v374_v34 = vmax.f32 %v254_v24, 0.0  ;;  %v390_v40 = vmax.f32 %v318_v32, 0.0  ;;  %v321_v41 = vadd.f32 %v1086_v37, %v1322_v22  ;;  %v312_v42 = vpop.f32.mrb[3].mxu1 }
  0xe1   :  { %v249_v31 = vadd.f32 %v1322_v22, %v248_v29  ;;  %v372_v38 = vmax.f32 %v246_v26, 0.0  ;;  %v388_v44 = vmax.f32 %v310_v36, 0.0  ;;  %v313_v45 = vadd.f32 %v1322_v22, %v312_v42 }
  0xe2   :  { %v375_v35 = vmax.f32 %v257_v28, 0.0  ;;  %v391_v48 = vmax.f32 %v321_v41, 0.0 }
  0xe3   :  { %v373_v39 = vmax.f32 %v249_v31, 0.0  ;;  %v389_v51 = vmax.f32 %v313_v45, 0.0 }
  0xe4   :  { %v405_v43 = vpack.c.bf16 %v375_v35, %v374_v34  ;;  %v1335_v54 = vpack.c.bf16 %v391_v48, %v390_v40 }
  0xe5   :  { %v404_v46 = vpack.c.bf16 %v373_v39, %v372_v38  ;;  %v1073_v47 = vpop.f32.mrb[4].mxu0  ;;  %v1339_v57 = vpack.c.bf16 %v389_v51, %v388_v44  ;;  %v1089_v58 = vpop.f32.mrb[4].mxu1 }
  0xe6   :  { %v270_v49 = vadd.f32 %v1073_v47, %v1322_v22  ;;  %v261_v50 = vpop.f32.mrb[5].mxu0  ;;  %v334_v60 = vadd.f32 %v1089_v58, %v1322_v22  ;;  %v325_v61 = vpop.f32.mrb[5].mxu1 }
  0xe7   :  { %v262_v52 = vadd.f32 %v1322_v22, %v261_v50  ;;  %v1074_v53 = vpop.f32.mrb[6].mxu0  ;;  %1103 = vmatprep.mubr.msk.bf16.mxu1 %vm162_vm0, %v404_v46  ;;  %v326_v0 = vadd.f32 %v1322_v22, %v325_v61  ;;  %v1090_v1 = vpop.f32.mrb[6].mxu1 }
  0xe8   :  { %v273_v55 = vadd.f32 %v1074_v53, %v1322_v22  ;;  %v264_v56 = vpop.f32.mrb[7].mxu0  ;;  %1104 = vmatmul.mubr.msk.bf16.vlgmr.msra.gmra.mrb[16].mxu1 %vm162_vm0, %v405_v43  ;;  %v378_v62 = vmax.f32 %v270_v49, 0.0  ;;  %v394_v4 = vmax.f32 %v334_v60, 0.0  ;;  %v337_v5 = vadd.f32 %v1090_v1, %v1322_v22  ;;  %v328_v6 = vpop.f32.mrb[7].mxu1 }
  0xe9   :  { %v265_v59 = vadd.f32 %v1322_v22, %v264_v56  ;;  %v376_v2 = vmax.f32 %v262_v52, 0.0  ;;  %v392_v8 = vmax.f32 %v326_v0, 0.0  ;;  %v329_v9 = vadd.f32 %v1322_v22, %v328_v6 }
  0xea   :  { %v379_v63 = vmax.f32 %v273_v55, 0.0  ;;  %v395_v12 = vmax.f32 %v337_v5, 0.0 }
  0xeb   :  { %v377_v3 = vmax.f32 %v265_v59, 0.0  ;;  %v393_v15 = vmax.f32 %v329_v9, 0.0 }
  0xec   :  { %v407_v7 = vpack.c.bf16 %v379_v63, %v378_v62  ;;  %v415_v18 = vpack.c.bf16 %v395_v12, %v394_v4 }
  0xed   :  { %v406_v10 = vpack.c.bf16 %v377_v3, %v376_v2  ;;  %v1077_v11 = vpop.f32.mrb[8].mxu0  ;;  %v414_v21 = vpack.c.bf16 %v393_v15, %v392_v8  ;;  %v1093_v23 = vpop.f32.mrb[8].mxu1 }
  0xee   :  { %v286_v13 = vadd.f32 %v1077_v11, %v1322_v22  ;;  %v277_v14 = vpop.f32.mrb[9].mxu0  ;;  %v350_v25 = vadd.f32 %v1093_v23, %v1322_v22  ;;  %v341_v26 = vpop.f32.mrb[9].mxu1 }
  0xef   :  { %v278_v16 = vadd.f32 %v1322_v22, %v277_v14  ;;  %v1078_v17 = vpop.f32.mrb[10].mxu0  ;;  %1107 = vmatprep.mubr.msk.bf16.mxu1 %vm162_vm0, %v406_v10  ;;  %v342_v29 = vadd.f32 %v1322_v22, %v341_v26  ;;  %v1094_v30 = vpop.f32.mrb[10].mxu1 }
  0xf0   :  { %v289_v19 = vadd.f32 %v1078_v17, %v1322_v22  ;;  %v280_v20 = vpop.f32.mrb[11].mxu0  ;;  %1108 = vmatmul.mubr.msk.bf16.gmra.mrb[20].mxu1 %vm162_vm0, %v407_v7  ;;  %v382_v27 = vmax.f32 %v286_v13, 0.0  ;;  %v398_v33 = vmax.f32 %v350_v25, 0.0  ;;  %v353_v34 = vadd.f32 %v1094_v30, %v1322_v22  ;;  %v344_v35 = vpop.f32.mrb[11].mxu1 }
  0xf1   :  { %v281_v24 = vadd.f32 %v1322_v22, %v280_v20  ;;  %v380_v31 = vmax.f32 %v278_v16, 0.0  ;;  %v396_v37 = vmax.f32 %v342_v29, 0.0  ;;  %v345_v38 = vadd.f32 %v1322_v22, %v344_v35 }
  0xf2   :  { %v383_v28 = vmax.f32 %v289_v19, 0.0  ;;  %v399_v41 = vmax.f32 %v353_v34, 0.0 }
  0xf3   :  { %v381_v32 = vmax.f32 %v281_v24, 0.0  ;;  %v397_v44 = vmax.f32 %v345_v38, 0.0 }
  0xf4   :  { %v409_v36 = vpack.c.bf16 %v383_v28, %v382_v27  ;;  %v417_v47 = vpack.c.bf16 %v399_v41, %v398_v33 }
  0xf5   :  { %v408_v39 = vpack.c.bf16 %v381_v32, %v380_v31  ;;  %v1081_v40 = vpop.f32.mrb[12].mxu0  ;;  %v416_v50 = vpack.c.bf16 %v397_v44, %v396_v37  ;;  %v1097_v51 = vpop.f32.mrb[12].mxu1 }
  0xf6   :  { %v302_v42 = vadd.f32 %v1081_v40, %v1322_v22  ;;  %v293_v43 = vpop.f32.mrb[13].mxu0  ;;  %v366_v53 = vadd.f32 %v1097_v51, %v1322_v22  ;;  %v357_v55 = vpop.f32.mrb[13].mxu1 }
  0xf7   :  { %v294_v45 = vadd.f32 %v1322_v22, %v293_v43  ;;  %v1082_v46 = vpop.f32.mrb[14].mxu0  ;;  %1111 = vmatprep.mubr.msk.bf16.mxu1 %vm162_vm0, %v408_v39  ;;  %v358_v59 = vadd.f32 %v1322_v22, %v357_v55  ;;  %v1098_v60 = vpop.f32.mrb[14].mxu1 }
  0xf8   :  { %v305_v48 = vadd.f32 %v1082_v46, %v1322_v22  ;;  %v296_v49 = vpop.f32.mrb[15].mxu0  ;;  %1112 = vmatmul.mubr.msk.bf16.gmra.mrb[24].mxu1 %vm162_vm0, %v409_v36  ;;  %v386_v56 = vmax.f32 %v302_v42, 0.0  ;;  %v402_v63 = vmax.f32 %v366_v53, 0.0  ;;  %v369_v0 = vadd.f32 %v1098_v60, %v1322_v22  ;;  %v360_v1 = vpop.f32.mrb[15].mxu1 }
  0xf9   :  { %v297_v52 = vadd.f32 %v1322_v22, %v296_v49  ;;  %v384_v61 = vmax.f32 %v294_v45, 0.0  ;;  %v400_v3 = vmax.f32 %v358_v59, 0.0  ;;  %v361_v4 = vadd.f32 %v1322_v22, %v360_v1 }
  0xfa   :  { %v387_v58 = vmax.f32 %v305_v48, 0.0  ;;  %v403_v6 = vmax.f32 %v369_v0, 0.0 }
  0xfb   :  { %v385_v62 = vmax.f32 %v297_v52, 0.0  ;;  %v401_v7 = vmax.f32 %v361_v4, 0.0 }
  0xfc   :  { %v411_v2 = vpack.c.bf16 %v387_v58, %v386_v56  ;;  %v419_v8 = vpack.c.bf16 %v403_v6, %v402_v63 }
  0xfd   :  { %v410_v5 = vpack.c.bf16 %v385_v62, %v384_v61  ;;  %v418_v9 = vpack.c.bf16 %v401_v7, %v400_v3 }
  0xff   :  { %1115 = vmatprep.mubr.msk.bf16.mxu1 %vm162_vm0, %v410_v5 }
 0x100   :  { %1116 = vmatmul.mubr.msk.bf16.gmra.mrb[28].mxu1 %vm162_vm0, %v411_v2 }
 0x101   :  { %1119 = vmatprep.mubr.msk.bf16.mxu1 %vm162_vm0, %v1339_v57  ;;  %v1381_v57 = vld [vmem:[%s1569_s4] ss:$0 sm:$0xff] }
 0x108   :  { %1120 = vmatmul.mubr.msk.bf16.gmra.mrb[32].mxu1 %vm162_vm0, %v1335_v54 }
 0x109   :  { %1123 = vmatprep.mubr.msk.bf16.mxu1 %vm162_vm0, %v414_v21 }
 0x110   :  { %1124 = vmatmul.mubr.msk.bf16.gmra.mrb[36].mxu1 %vm162_vm0, %v415_v18 }
 0x111   :  { %1127 = vmatprep.mubr.msk.bf16.mxu1 %vm162_vm0, %v416_v50 }
 0x118   :  { %1128 = vmatmul.mubr.msk.bf16.gmra.mrb[40].mxu1 %vm162_vm0, %v417_v47 }
 0x119   :  { %1131 = vmatprep.mubr.msk.bf16.mxu1 %vm162_vm0, %v418_v9 }
 0x120   :  { %1132 = vmatmul.mubr.msk.bf16.gmra.mrb[44].mxu1 %vm162_vm0, %v419_v8 }
 0x1bb   :  { %v1105_v22 = vpop.f32.mrb[16].mxu1 }
 0x1bc   :  { %v525_v10 = vpop.f32.mrb[17].mxu1  ;;  %v534_v11 = vadd.f32 %v1105_v22, %v1381_v57 }
 0x1bd   :  { %v1106_v54 = vpop.f32.mrb[18].mxu1  ;;  %v526_v14 = vadd.f32 %v1381_v57, %v525_v10 }
 0x1be   :  { %v537_v12 = vadd.f32 %v1106_v54, %v1381_v57  ;;  %v528_v13 = vpop.f32.mrb[19].mxu1 }
 0x1bf   :  { %v529_v15 = vadd.f32 %v1381_v57, %v528_v13 }
 0x1c0   :  { %v653_v16 = vpack.c.bf16 %v537_v12, %v534_v11 }
 0x1c1   :  { %v652_v17 = vpack.c.bf16 %v529_v15, %v526_v14 }
 0x1c3   :  { %v1109_v18 = vpop.f32.mrb[20].mxu1  ;;  %1139 = vmatprep.mubr.msk.bf16.mxu0 %vm162_vm0, %v652_v17 }
 0x1c4   :  { %v541_v19 = vpop.f32.mrb[21].mxu1  ;;  %1140 = vmatmul.mubr.msk.bf16.vlgmr.msra.gmra.mrb[16].mxu0 %vm162_vm0, %v653_v16  ;;  %v550_v21 = vadd.f32 %v1109_v18, %v1381_v57 }
 0x1c5   :  { %v1110_v20 = vpop.f32.mrb[22].mxu1  ;;  %v542_v25 = vadd.f32 %v1381_v57, %v541_v19 }
 0x1c6   :  { %v553_v23 = vadd.f32 %v1110_v20, %v1381_v57  ;;  %v544_v24 = vpop.f32.mrb[23].mxu1 }
 0x1c7   :  { %v545_v26 = vadd.f32 %v1381_v57, %v544_v24 }
 0x1c8   :  { %v655_v27 = vpack.c.bf16 %v553_v23, %v550_v21 }
 0x1c9   :  { %v654_v28 = vpack.c.bf16 %v545_v26, %v542_v25  ;;  %v1434_v26 = vld [vmem:[%s1570_s6] ss:$0 sm:$0xff] }
 0x1cb   :  { %v1113_v29 = vpop.f32.mrb[24].mxu1  ;;  %1143 = vmatprep.mubr.msk.bf16.mxu0 %vm162_vm0, %v654_v28 }
 0x1cc   :  { %v557_v30 = vpop.f32.mrb[25].mxu1  ;;  %1144 = vmatmul.mubr.msk.bf16.gmra.mrb[20].mxu0 %vm162_vm0, %v655_v27  ;;  %v566_v32 = vadd.f32 %v1113_v29, %v1381_v57 }
 0x1cd   :  { %v1114_v31 = vpop.f32.mrb[26].mxu1  ;;  %v558_v35 = vadd.f32 %v1381_v57, %v557_v30 }
 0x1ce   :  { %v569_v33 = vadd.f32 %v1114_v31, %v1381_v57  ;;  %v560_v34 = vpop.f32.mrb[27].mxu1 }
 0x1cf   :  { %v561_v36 = vadd.f32 %v1381_v57, %v560_v34 }
 0x1d0   :  { %v657_v37 = vpack.c.bf16 %v569_v33, %v566_v32 }
 0x1d1   :  { %v656_v38 = vpack.c.bf16 %v561_v36, %v558_v35 }
 0x1d3   :  { %v1117_v39 = vpop.f32.mrb[28].mxu1  ;;  %1147 = vmatprep.mubr.msk.bf16.mxu0 %vm162_vm0, %v656_v38 }
 0x1d4   :  { %v573_v40 = vpop.f32.mrb[29].mxu1  ;;  %1148 = vmatmul.mubr.msk.bf16.gmra.mrb[24].mxu0 %vm162_vm0, %v657_v37  ;;  %v582_v42 = vadd.f32 %v1117_v39, %v1381_v57 }
 0x1d5   :  { %v1118_v41 = vpop.f32.mrb[30].mxu1  ;;  %v574_v45 = vadd.f32 %v1381_v57, %v573_v40 }
 0x1d6   :  { %v585_v43 = vadd.f32 %v1118_v41, %v1381_v57  ;;  %v576_v44 = vpop.f32.mrb[31].mxu1 }
 0x1d7   :  { %v577_v46 = vadd.f32 %v1381_v57, %v576_v44 }
 0x1d8   :  { %v659_v47 = vpack.c.bf16 %v585_v43, %v582_v42 }
 0x1d9   :  { %v658_v48 = vpack.c.bf16 %v577_v46, %v574_v45 }
 0x1db   :  { %v1121_v49 = vpop.f32.mrb[32].mxu1  ;;  %1151 = vmatprep.mubr.msk.bf16.mxu0 %vm162_vm0, %v658_v48 }
 0x1dc   :  { %v589_v50 = vpop.f32.mrb[33].mxu1  ;;  %1152 = vmatmul.mubr.msk.bf16.gmra.mrb[28].mxu0 %vm162_vm0, %v659_v47  ;;  %v598_v52 = vadd.f32 %v1121_v49, %v1381_v57 }
 0x1dd   :  { %v1122_v51 = vpop.f32.mrb[34].mxu1  ;;  %v590_v56 = vadd.f32 %v1381_v57, %v589_v50 }
 0x1de   :  { %v601_v53 = vadd.f32 %v1122_v51, %v1381_v57  ;;  %v592_v55 = vpop.f32.mrb[35].mxu1 }
 0x1df   :  { %v593_v58 = vadd.f32 %v1381_v57, %v592_v55 }
 0x1e0   :  { %v661_v59 = vpack.c.bf16 %v601_v53, %v598_v52 }
 0x1e1   :  { %v660_v60 = vpack.c.bf16 %v593_v58, %v590_v56 }
 0x1e3   :  { %v1125_v61 = vpop.f32.mrb[36].mxu1  ;;  %1155 = vmatprep.mubr.msk.bf16.mxu0 %vm162_vm0, %v660_v60 }
 0x1e4   :  { %v605_v62 = vpop.f32.mrb[37].mxu1  ;;  %1156 = vmatmul.mubr.msk.bf16.gmra.mrb[32].mxu0 %vm162_vm0, %v661_v59  ;;  %v614_v0 = vadd.f32 %v1125_v61, %v1381_v57 }
 0x1e5   :  { %v1126_v63 = vpop.f32.mrb[38].mxu1  ;;  %v606_v3 = vadd.f32 %v1381_v57, %v605_v62 }
 0x1e6   :  { %v617_v1 = vadd.f32 %v1126_v63, %v1381_v57  ;;  %v608_v2 = vpop.f32.mrb[39].mxu1 }
 0x1e7   :  { %v609_v4 = vadd.f32 %v1381_v57, %v608_v2 }
 0x1e8   :  { %v663_v5 = vpack.c.bf16 %v617_v1, %v614_v0 }
 0x1e9   :  { %v662_v6 = vpack.c.bf16 %v609_v4, %v606_v3 }
 0x1eb   :  { %v1129_v7 = vpop.f32.mrb[40].mxu1  ;;  %1159 = vmatprep.mubr.msk.bf16.mxu0 %vm162_vm0, %v662_v6 }
 0x1ec   :  { %v621_v8 = vpop.f32.mrb[41].mxu1  ;;  %1160 = vmatmul.mubr.msk.bf16.gmra.mrb[36].mxu0 %vm162_vm0, %v663_v5  ;;  %v630_v22 = vadd.f32 %v1129_v7, %v1381_v57 }
 0x1ed   :  { %v1130_v9 = vpop.f32.mrb[42].mxu1  ;;  %v622_v11 = vadd.f32 %v1381_v57, %v621_v8 }
 0x1ee   :  { %v633_v10 = vadd.f32 %v1130_v9, %v1381_v57  ;;  %v624_v54 = vpop.f32.mrb[43].mxu1 }
 0x1ef   :  { %v625_v12 = vadd.f32 %v1381_v57, %v624_v54 }
 0x1f0   :  { %v665_v13 = vpack.c.bf16 %v633_v10, %v630_v22 }
 0x1f1   :  { %v664_v14 = vpack.c.bf16 %v625_v12, %v622_v11 }
 0x1f3   :  { %v1133_v15 = vpop.f32.mrb[44].mxu1  ;;  %1163 = vmatprep.mubr.msk.bf16.mxu0 %vm162_vm0, %v664_v14 }
 0x1f4   :  { %v637_v16 = vpop.f32.mrb[45].mxu1  ;;  %1164 = vmatmul.mubr.msk.bf16.gmra.mrb[40].mxu0 %vm162_vm0, %v665_v13  ;;  %v646_v18 = vadd.f32 %v1133_v15, %v1381_v57 }
 0x1f5   :  { %v1134_v17 = vpop.f32.mrb[46].mxu1  ;;  %v638_v21 = vadd.f32 %v1381_v57, %v637_v16 }
 0x1f6   :  { %v649_v19 = vadd.f32 %v1134_v17, %v1381_v57  ;;  %v640_v20 = vpop.f32.mrb[47].mxu1 }
 0x1f7   :  { %v641_v23 = vadd.f32 %v1381_v57, %v640_v20 }
 0x1f8   :  { %v667_v24 = vpack.c.bf16 %v649_v19, %v646_v18 }
 0x1f9   :  { %v666_v25 = vpack.c.bf16 %v641_v23, %v638_v21 }
 0x1fb   :  { %1167 = vmatprep.mubr.msk.bf16.mxu0 %vm162_vm0, %v666_v25 }
 0x1fc   :  { %1168 = vmatmul.mubr.msk.bf16.gmra.mrb[44].mxu0 %vm162_vm0, %v667_v24 }
 0x297   :  { %v1141_v27 = vpop.f32.mrb[16].mxu0 }
 0x298   :  { %v782_v28 = vadd.f32 %v1141_v27, %v1434_v26  ;;  %v773_v29 = vpop.f32.mrb[17].mxu0 }
 0x299   :  { %v774_v30 = vadd.f32 %v1434_v26, %v773_v29  ;;  %v1142_v31 = vpop.f32.mrb[18].mxu0 }
 0x29a   :  { %902 = vst [vmem:[%s1571_s7 + $0x10] sm:$0xff] %v782_v28  ;;  %v785_v57 = vadd.f32 %v1142_v31, %v1434_v26  ;;  %v776_v32 = vpop.f32.mrb[19].mxu0 }
 0x29b   :  { %900 = vst [vmem:[%s1571_s7] sm:$0xff] %v774_v30  ;;  %v777_v33 = vadd.f32 %v1434_v26, %v776_v32 }
 0x29c   :  { %903 = vst [vmem:[%s1571_s7 + $0x18] sm:$0xff] %v785_v57 }
 0x29d   :  { %901 = vst [vmem:[%s1571_s7 + $0x8] sm:$0xff] %v777_v33 }
 0x29f   :  { %v1145_v34 = vpop.f32.mrb[20].mxu0 }
 0x2a0   :  { %v798_v35 = vadd.f32 %v1145_v34, %v1434_v26  ;;  %v789_v36 = vpop.f32.mrb[21].mxu0 }
 0x2a1   :  { %v790_v37 = vadd.f32 %v1434_v26, %v789_v36  ;;  %v1146_v38 = vpop.f32.mrb[22].mxu0 }
 0x2a2   :  { %906 = vst [vmem:[%s1571_s7 + $0x30] sm:$0xff] %v798_v35  ;;  %v801_v39 = vadd.f32 %v1146_v38, %v1434_v26  ;;  %v792_v40 = vpop.f32.mrb[23].mxu0 }
 0x2a3   :  { %904 = vst [vmem:[%s1571_s7 + $0x20] sm:$0xff] %v790_v37  ;;  %v793_v41 = vadd.f32 %v1434_v26, %v792_v40 }
 0x2a4   :  { %907 = vst [vmem:[%s1571_s7 + $0x38] sm:$0xff] %v801_v39 }
 0x2a5   :  { %905 = vst [vmem:[%s1571_s7 + $0x28] sm:$0xff] %v793_v41 }
 0x2a7   :  { %v1149_v42 = vpop.f32.mrb[24].mxu0 }
 0x2a8   :  { %v814_v43 = vadd.f32 %v1149_v42, %v1434_v26  ;;  %v805_v44 = vpop.f32.mrb[25].mxu0 }
 0x2a9   :  { %v806_v45 = vadd.f32 %v1434_v26, %v805_v44  ;;  %v1150_v46 = vpop.f32.mrb[26].mxu0 }
 0x2aa   :  { %910 = vst [vmem:[%s1571_s7 + $0x50] sm:$0xff] %v814_v43  ;;  %v817_v47 = vadd.f32 %v1150_v46, %v1434_v26  ;;  %v808_v48 = vpop.f32.mrb[27].mxu0 }
 0x2ab   :  { %908 = vst [vmem:[%s1571_s7 + $0x40] sm:$0xff] %v806_v45  ;;  %v809_v49 = vadd.f32 %v1434_v26, %v808_v48 }
 0x2ac   :  { %911 = vst [vmem:[%s1571_s7 + $0x58] sm:$0xff] %v817_v47 }
 0x2ad   :  { %909 = vst [vmem:[%s1571_s7 + $0x48] sm:$0xff] %v809_v49 }
 0x2af   :  { %v1153_v50 = vpop.f32.mrb[28].mxu0 }
 0x2b0   :  { %v830_v51 = vadd.f32 %v1153_v50, %v1434_v26  ;;  %v821_v52 = vpop.f32.mrb[29].mxu0 }
 0x2b1   :  { %v822_v53 = vadd.f32 %v1434_v26, %v821_v52  ;;  %v1154_v55 = vpop.f32.mrb[30].mxu0 }
 0x2b2   :  { %914 = vst [vmem:[%s1571_s7 + $0x70] sm:$0xff] %v830_v51  ;;  %v833_v56 = vadd.f32 %v1154_v55, %v1434_v26  ;;  %v824_v58 = vpop.f32.mrb[31].mxu0 }
 0x2b3   :  { %912 = vst [vmem:[%s1571_s7 + $0x60] sm:$0xff] %v822_v53  ;;  %v825_v59 = vadd.f32 %v1434_v26, %v824_v58 }
 0x2b4   :  { %915 = vst [vmem:[%s1571_s7 + $0x78] sm:$0xff] %v833_v56 }
 0x2b5   :  { %913 = vst [vmem:[%s1571_s7 + $0x68] sm:$0xff] %v825_v59 }
 0x2b7   :  { %v1157_v60 = vpop.f32.mrb[32].mxu0 }
 0x2b8   :  { %v846_v61 = vadd.f32 %v1157_v60, %v1434_v26  ;;  %v837_v62 = vpop.f32.mrb[33].mxu0 }
 0x2b9   :  { %v838_v63 = vadd.f32 %v1434_v26, %v837_v62  ;;  %v1158_v0 = vpop.f32.mrb[34].mxu0 }
 0x2ba   :  { %918 = vst [vmem:[%s1571_s7 + $0x90] sm:$0xff] %v846_v61  ;;  %v849_v1 = vadd.f32 %v1158_v0, %v1434_v26  ;;  %v840_v2 = vpop.f32.mrb[35].mxu0 }
 0x2bb   :  { %916 = vst [vmem:[%s1571_s7 + $0x80] sm:$0xff] %v838_v63  ;;  %v841_v3 = vadd.f32 %v1434_v26, %v840_v2 }
 0x2bc   :  { %919 = vst [vmem:[%s1571_s7 + $0x98] sm:$0xff] %v849_v1 }
 0x2bd   :  { %917 = vst [vmem:[%s1571_s7 + $0x88] sm:$0xff] %v841_v3 }
 0x2bf   :  { %v1161_v4 = vpop.f32.mrb[36].mxu0 }
 0x2c0   :  { %v862_v5 = vadd.f32 %v1161_v4, %v1434_v26  ;;  %v853_v6 = vpop.f32.mrb[37].mxu0 }
 0x2c1   :  { %v854_v7 = vadd.f32 %v1434_v26, %v853_v6  ;;  %v1162_v8 = vpop.f32.mrb[38].mxu0 }
 0x2c2   :  { %922 = vst [vmem:[%s1571_s7 + $0xb0] sm:$0xff] %v862_v5  ;;  %v865_v9 = vadd.f32 %v1162_v8, %v1434_v26  ;;  %v856_v22 = vpop.f32.mrb[39].mxu0 }
 0x2c3   :  { %920 = vst [vmem:[%s1571_s7 + $0xa0] sm:$0xff] %v854_v7  ;;  %v857_v10 = vadd.f32 %v1434_v26, %v856_v22 }
 0x2c4   :  { %923 = vst [vmem:[%s1571_s7 + $0xb8] sm:$0xff] %v865_v9 }
 0x2c5   :  { %921 = vst [vmem:[%s1571_s7 + $0xa8] sm:$0xff] %v857_v10 }
 0x2c7   :  { %v1165_v54 = vpop.f32.mrb[40].mxu0 }
 0x2c8   :  { %v878_v11 = vadd.f32 %v1165_v54, %v1434_v26  ;;  %v869_v12 = vpop.f32.mrb[41].mxu0 }
 0x2c9   :  { %v870_v13 = vadd.f32 %v1434_v26, %v869_v12  ;;  %v1166_v14 = vpop.f32.mrb[42].mxu0 }
 0x2ca   :  { %926 = vst [vmem:[%s1571_s7 + $0xd0] sm:$0xff] %v878_v11  ;;  %v881_v15 = vadd.f32 %v1166_v14, %v1434_v26  ;;  %v872_v16 = vpop.f32.mrb[43].mxu0 }
 0x2cb   :  { %924 = vst [vmem:[%s1571_s7 + $0xc0] sm:$0xff] %v870_v13  ;;  %v873_v17 = vadd.f32 %v1434_v26, %v872_v16 }
 0x2cc   :  { %927 = vst [vmem:[%s1571_s7 + $0xd8] sm:$0xff] %v881_v15 }
 0x2cd   :  { %925 = vst [vmem:[%s1571_s7 + $0xc8] sm:$0xff] %v873_v17 }
 0x2cf   :  { %v1169_v18 = vpop.f32.mrb[44].mxu0 }
 0x2d0   :  { %v894_v19 = vadd.f32 %v1169_v18, %v1434_v26  ;;  %v885_v20 = vpop.f32.mrb[45].mxu0 }
 0x2d1   :  { %v886_v21 = vadd.f32 %v1434_v26, %v885_v20  ;;  %v1170_v23 = vpop.f32.mrb[46].mxu0 }
 0x2d2   :  { %930 = vst [vmem:[%s1571_s7 + $0xf0] sm:$0xff] %v894_v19  ;;  %v897_v24 = vadd.f32 %v1170_v23, %v1434_v26  ;;  %v888_v25 = vpop.f32.mrb[47].mxu0 }
 0x2d3   :  { %928 = vst [vmem:[%s1571_s7 + $0xe0] sm:$0xff] %v886_v21  ;;  %v889_v27 = vadd.f32 %v1434_v26, %v888_v25 }
 0x2d4   :  { %931 = vst [vmem:[%s1571_s7 + $0xf8] sm:$0xff] %v897_v24 }
 0x2d5   :  { %929 = vst [vmem:[%s1571_s7 + $0xe8] sm:$0xff] %v889_v27 }

</bundles_post_ra>
